<compile_context>
chip_gen: v5e
topology: v5e:2x2
jax: 0.10.0
libtpu: 0.0.40
codegen_flags: <defaults>
</compile_context>

<pallas_src>
import functools

import jax
import jax.numpy as jnp
from jax.experimental import pallas as pl
from jax.experimental.pallas import tpu as pltpu


def _round_up(n, m):
    return -(-n // m) * m


# --------------------------------- kernel -----------------------------------

def _temporal_block_kernel(x_ref, w1_ref, b1_ref, w2_ref, b2_ref,
                           o_ref, xext_ref, h1ext_ref, *,
                           kernel_size, dilation, c_out, has_downsample,
                           fuse_taps):
    K, d = kernel_size, dilation
    P = (K - 1) * d                          # causal left halo width
    Pa = _round_up(P, 128) if P > 0 else 0   # lane-aligned halo allocation
    TL = o_ref.shape[-1]                     # time-tile width
    cdt = xext_ref.dtype                     # compute dtype (f32 or bf16)
    t = pl.program_id(1)
    n_t = pl.num_programs(1)

    if P > 0:
        @pl.when(t == 0)
        def _():
            # Zero the (lane-aligned) halo prefix at the start of each sequence.
            xext_ref[:, :Pa] = jnp.zeros((xext_ref.shape[0], Pa), cdt)
            h1ext_ref[:, :Pa] = jnp.zeros((h1ext_ref.shape[0], Pa), cdt)

    # Store the incoming tile at the lane-aligned offset -> unmasked vst.
    xext_ref[:, Pa:] = x_ref[...].astype(cdt)

    def causal_conv(ext_ref, w_ref, b_ref):
        """Causal dilated conv over ext = [pad | halo(P) | tile(TL)].

        Rows [:c_out] of w_ref hold the conv weight laid out tap-major as
        (c_out, K*C).  Any extra rows (2*c_out total when the 1x1 downsample is
        fused into conv1) are zero except in the last-tap block, so they yield
        Wd @ x_tile.  Returns (conv_f32, extra_f32_or_None), bias included.
        """
        Cc = w_ref.shape[1] // K
        n_rows = w_ref.shape[0]
        off = Pa - P
        last_tap = ext_ref[:, Pa:Pa + TL]            # lane-aligned read
        if fuse_taps:
            # im2col: K statically shifted views stacked on the contraction
            # axis, then one fused MXU matmul with f32 accumulation.
            taps = [ext_ref[:, off + k * d: off + k * d + TL]
                    for k in range(K - 1)] + [last_tap]
            stack = jnp.concatenate(taps, axis=0) if K > 1 else taps[0]
            full = jnp.dot(w_ref[...], stack,
                           preferred_element_type=jnp.float32) + b_ref[...]
        else:
            # Wide channels: K accumulating MXU matmuls (no K*C*TL concat temp).
            # Only the last tap needs the extra (downsample) rows.
            full = jnp.dot(w_ref[:, (K - 1) * Cc:], last_tap,
                           preferred_element_type=jnp.float32) + b_ref[...]
            conv = full[:c_out]
            for k in range(K - 1):
                conv = conv + jnp.dot(
                    w_ref[:c_out, k * Cc:(k + 1) * Cc],
                    ext_ref[:, off + k * d: off + k * d + TL],
                    preferred_element_type=jnp.float32)
            extra = full[c_out:] if n_rows > c_out else None
            return conv, extra
        extra = full[c_out:] if n_rows > c_out else None
        return full[:c_out], extra

    h1_pre, res_ds = causal_conv(xext_ref, w1_ref, b1_ref)
    h1 = jnp.maximum(h1_pre, 0.0)
    # TODO(synk): nn.Dropout is identity in eval mode; train-mode dropout omitted.
    h1ext_ref[:, Pa:] = h1.astype(cdt)
    h2_pre, _ = causal_conv(h1ext_ref, w2_ref, b2_ref)
    h2 = jnp.maximum(h2_pre, 0.0)

    if has_downsample:
        res = res_ds                                  # from the fused matmul
    else:
        res = xext_ref[:, Pa:].astype(jnp.float32)    # identity residual

    o_ref[...] = jnp.maximum(h2 + res, 0.0).astype(o_ref.dtype)

    # Carry the last P time steps as the next tile's causal halo; skip on the
    # last tile of each sequence (the halo scheme requires the time axis to
    # stay sequential per batch element, which the "arbitrary" axis guarantees).
    if P > 0:
        @pl.when(t != n_t - 1)
        def _():
            xext_ref[:, Pa - P:Pa] = xext_ref[:, Pa + TL - P:Pa + TL]
            h1ext_ref[:, Pa - P:Pa] = h1ext_ref[:, Pa + TL - P:Pa + TL]


# --------------------------------- wrapper ----------------------------------

def _pick_vmem_limit(estimate_bytes):
    phys = 64 * 1024 * 1024                 # conservative default (v7x per-TC)
    try:
        phys = int(pltpu.get_tpu_info().vmem_capacity_bytes)
    except Exception:
        pass
    return int(min(phys * 7 // 8, max(32 * 1024 * 1024, 2 * estimate_bytes)))


def temporal_block(x, w1, b1, w2, b2, wd=None, bd=None, *,
                   kernel_size, dilation, time_tile=None,
                   compute_dtype=None, out_dtype=None, fuse_taps=None):
    """Fused TemporalBlock forward (eval mode, padding == (K-1)*dilation).

    x : (N, C_in, L).   w1: (C_out, C_in, K), b1: (C_out,)  [PyTorch layout,
    unit height dim squeezed].   w2: (C_out, C_out, K), b2: (C_out,).
    wd: (C_out, C_in) / bd: (C_out,) 1x1 downsample, or None for the identity
    residual (requires C_in == C_out).   Returns (N, C_out, L).
    """
    N, C_in, L = x.shape
    C_out = w1.shape[0]
    K, d = kernel_size, dilation
    P = (K - 1) * d
    Pa = _round_up(P, 128) if P > 0 else 0
    has_downsample = wd is not None
    if not has_downsample:
        assert C_in == C_out, "identity residual requires C_in == C_out"

    if compute_dtype is None:   # bf16 compute when the activations are bf16
        compute_dtype = jnp.bfloat16 if x.dtype == jnp.bfloat16 else jnp.float32
    compute_dtype = jnp.dtype(compute_dtype)
    out_dtype = jnp.dtype(x.dtype if out_dtype is None else out_dtype)
    if fuse_taps is None:
        # Fuse the K taps into one contraction only when it helps fill the MXU.
        fuse_taps = min(C_in, C_out) < 128

    M1 = 2 * C_out if has_downsample else C_out   # conv1 rows (+ fused downsample)

    # ---- per-grid-step VMEM footprint estimate (tiling + vmem limit) --------
    def vmem_estimate(tl):
        cb = compute_dtype.itemsize
        est = 2 * C_in * tl * x.dtype.itemsize            # x block, double buffered
        est += 2 * C_out * tl * out_dtype.itemsize        # out block, double buffered
        est += 2 * (M1 * K * C_in + C_out * K * C_out) * cb + 8 * (M1 + C_out)
        est += (C_in + C_out) * (Pa + tl) * cb            # [halo|tile] scratch
        if fuse_taps:
            est += K * max(C_in, C_out) * tl * cb         # im2col stack temp
        est += 4 * (M1 + 2 * C_out) * tl                  # f32 acc / h1 / h2 temps
        return est

    # ---- time tiling: biggest 128-multiple tile within the VMEM budget ------
    VMEM_BUDGET = 20 * 1024 * 1024          # leaves headroom on v7x (64 MiB VMEM)
    if time_tile is None:
        time_tile = L
        if L % 128 == 0 and vmem_estimate(L) > VMEM_BUDGET:
            for tl in (8192, 4096, 2048, 1024, 512, 256, 128):
                if tl < L and L % tl == 0 and tl >= P:
                    time_tile = tl
                    if vmem_estimate(tl) <= VMEM_BUDGET:
                        break
    n_t = L // time_tile
    assert L % time_tile == 0, "L must be divisible by time_tile"
    if n_t > 1:
        assert time_tile >= P, "time_tile must cover the causal halo"
        assert time_tile % 128 == 0, "tiled time dimension must be lane-aligned"

    # ---- fused, tap-major weights (downsample folded into conv1) ------------
    def conv_w_fused(w):                     # (C_out, C, K) -> (C_out, K*C)
        return jnp.transpose(w, (0, 2, 1)).reshape(w.shape[0], -1)

    w1f = conv_w_fused(w1)
    b1f = jnp.ravel(b1)
    if has_downsample:
        wd_rows = jnp.zeros((C_out, K * C_in), w1f.dtype)
        wd_rows = wd_rows.at[:, (K - 1) * C_in:].set(wd.reshape(C_out, C_in))
        w1f = jnp.concatenate([w1f, wd_rows], axis=0)          # (2*C_out, K*C_in)
        b1f = jnp.concatenate([b1f, jnp.ravel(bd)])
    w1f = w1f.astype(compute_dtype)
    w2f = conv_w_fused(w2).astype(compute_dtype)
    b1f = b1f.reshape(-1, 1).astype(jnp.float32)
    b2f = jnp.ravel(b2).reshape(-1, 1).astype(jnp.float32)

    flops = 2 * N * L * (K * C_in * C_out + K * C_out * C_out
                         + (C_in * C_out if has_downsample else 0))
    bytes_accessed = int(N * C_in * L * x.dtype.itemsize
                         + N * C_out * L * out_dtype.itemsize
                         + (w1f.size + w2f.size) * compute_dtype.itemsize
                         + (b1f.size + b2f.size) * 4)

    kern = functools.partial(_temporal_block_kernel, kernel_size=K, dilation=d,
                             c_out=C_out, has_downsample=has_downsample,
                             fuse_taps=fuse_taps)

    return pl.pallas_call(
        kern,
        out_shape=jax.ShapeDtypeStruct((N, C_out, L), out_dtype),
        grid=(N, n_t),
        in_specs=[
            # Channel dims are full-extent blocks (exempt from the (8,128)
            # rule), so no wrapper-side pad of x / slice of out is needed.
            pl.BlockSpec((None, C_in, time_tile), lambda n, t: (n, 0, t)),
            pl.BlockSpec((M1, K * C_in), lambda n, t: (0, 0)),
            pl.BlockSpec((M1, 1), lambda n, t: (0, 0)),
            pl.BlockSpec((C_out, K * C_out), lambda n, t: (0, 0)),
            pl.BlockSpec((C_out, 1), lambda n, t: (0, 0)),
        ],
        out_specs=pl.BlockSpec((None, C_out, time_tile), lambda n, t: (n, 0, t)),
        scratch_shapes=[
            pltpu.VMEM((C_in, Pa + time_tile), compute_dtype),   # x  [halo|tile]
            pltpu.VMEM((C_out, Pa + time_tile), compute_dtype),  # h1 [halo|tile]
        ],
        compiler_params=pltpu.CompilerParams(
            dimension_semantics=("parallel", "arbitrary"),
            vmem_limit_bytes=_pick_vmem_limit(vmem_estimate(time_tile))),
        cost_estimate=pl.CostEstimate(flops=flops, transcendentals=0,
                                      bytes_accessed=bytes_accessed),
    )(x, w1f, b1f, w2f, b2f)


# ----------------------------- parameter glue -------------------------------

def _weight_normed_conv_weight(key, c_out, c_in, k):
    """Effective weight of weight_norm(nn.Conv2d(c_in, c_out, (1, k))) with the
    unit height dim squeezed -> (c_out, c_in, k)."""
    kv, kg = jax.random.split(key)
    v = 0.01 * jax.random.normal(kv, (c_out, c_in, 1, k), jnp.float32)
    g = jax.random.uniform(kg, (c_out, 1, 1, 1), jnp.float32, 0.5, 1.5)
    norm = jnp.sqrt(jnp.sum(v * v, axis=(1, 2, 3), keepdims=True))
    return (g * v / norm)[:, :, 0, :]


def _reference(x, w1, b1, w2, b2, wd, bd, *, kernel_size, dilation):
    """Plain-JAX reference of the PyTorch forward (eval mode)."""
    K, d = kernel_size, dilation
    P = (K - 1) * d

    def conv(inp, w, b):
        xp = jnp.pad(inp, ((0, 0), (0, 0), (P, 0)))
        L = inp.shape[-1]
        out = sum(jnp.einsum('oc,ncl->nol', w[:, :, k],
                             xp[:, :, k * d:k * d + L]) for k in range(K))
        return out + b.reshape(1, -1, 1)

    h1 = jnp.maximum(conv(x, w1, b1), 0.0)
    h2 = jnp.maximum(conv(h1, w2, b2), 0.0)
    if wd is None:
        res = x
    else:
        res = jnp.einsum('oc,ncl->nol', wd, x) + bd.reshape(1, -1, 1)
    return jnp.maximum(h2 + res, 0.0)


# ----------------------------------- test -----------------------------------

if __name__ == "__main__":
    # ---- config 1: downsample path (C_in != C_out), single time tile, f32 ---
    N, C_IN, C_OUT, L = 2, 4, 8, 16
    K, DIL = 3, 2
    kx, k1, kb1, k2, kb2, kd, kbd = jax.random.split(jax.random.PRNGKey(0), 7)
    x = jax.random.normal(kx, (N, C_IN, L), jnp.float32)
    w1 = _weight_normed_conv_weight(k1, C_OUT, C_IN, K)
    w2 = _weight_normed_conv_weight(k2, C_OUT, C_OUT, K)
    b1 = 0.05 * jax.random.normal(kb1, (C_OUT,), jnp.float32)
    b2 = 0.05 * jax.random.normal(kb2, (C_OUT,), jnp.float32)
    wd = 0.01 * jax.random.normal(kd, (C_OUT, C_IN), jnp.float32)
    bd = 0.05 * jax.random.normal(kbd, (C_OUT,), jnp.float32)

    ref = _reference(x, w1, b1, w2, b2, wd, bd, kernel_size=K, dilation=DIL)

    out = jax.block_until_ready(
        temporal_block(x, w1, b1, w2, b2, wd, bd, kernel_size=K, dilation=DIL))
    assert out.shape == (N, C_OUT, L)
    assert jnp.allclose(out, ref, atol=1e-4, rtol=1e-3), "config-1 mismatch"

    # ---- config 1b: same, but forcing the split-taps (wide-channel) path ----
    out1b = jax.block_until_ready(
        temporal_block(x, w1, b1, w2, b2, wd, bd, kernel_size=K, dilation=DIL,
                       fuse_taps=False))
    assert jnp.allclose(out1b, ref, atol=1e-4, rtol=1e-3), "config-1b mismatch"

    # ---- config 2: identity residual, multiple time tiles (halo carry), f32 -
    N2, C2, L2, K2, DIL2, TL2 = 2, 16, 512, 3, 4, 128
    kx2, k21, kb21, k22, kb22 = jax.random.split(jax.random.PRNGKey(1), 5)
    x2 = jax.random.normal(kx2, (N2, C2, L2), jnp.float32)
    w21 = _weight_normed_conv_weight(k21, C2, C2, K2)
    w22 = _weight_normed_conv_weight(k22, C2, C2, K2)
    b21 = 0.05 * jax.random.normal(kb21, (C2,), jnp.float32)
    b22 = 0.05 * jax.random.normal(kb22, (C2,), jnp.float32)

    ref2 = _reference(x2, w21, b21, w22, b22, None, None,
                      kernel_size=K2, dilation=DIL2)
    out2 = jax.block_until_ready(
        temporal_block(x2, w21, b21, w22, b22, None, None,
                       kernel_size=K2, dilation=DIL2, time_tile=TL2))
    assert out2.shape == (N2, C2, L2)
    assert jnp.allclose(out2, ref2, atol=1e-3, rtol=1e-3), "config-2 mismatch"

    # ---- config 3: same as config 2 but bf16 compute, f32 accumulation ------
    out3 = jax.block_until_ready(
        temporal_block(x2, w21, b21, w22, b22, None, None,
                       kernel_size=K2, dilation=DIL2, time_tile=TL2,
                       compute_dtype=jnp.bfloat16))

    def _rt(a):  # bf16 round-trip so the reference sees the same rounded values
        return a.astype(jnp.bfloat16).astype(jnp.float32)

    ref3 = _reference(_rt(x2), _rt(w21), b21, _rt(w22), b22, None, None,
                      kernel_size=K2, dilation=DIL2)
    assert jnp.allclose(out3, ref3, atol=5e-2, rtol=5e-2), "config-3 mismatch"

    print("KERNEL_OK")
</pallas_src>

<mosaic_0001>
module attributes {stable_mosaic.version = 11 : i64} {
  func.func @_temporal_block_kernel(%arg0: i32, %arg1: i32, %arg2: memref<1x4x16xf32, #tpu.memory_space<vmem>>, %arg3: memref<16x12xf32, #tpu.memory_space<vmem>>, %arg4: memref<16x1xf32, #tpu.memory_space<vmem>>, %arg5: memref<8x24xf32, #tpu.memory_space<vmem>>, %arg6: memref<8x1xf32, #tpu.memory_space<vmem>>, %arg7: memref<1x8x16xf32, #tpu.memory_space<vmem>>, %arg8: memref<4x144xf32, #tpu.memory_space<vmem>>, %arg9: memref<8x144xf32, #tpu.memory_space<vmem>>) attributes {dimension_semantics = [#tpu.dimension_semantics<parallel>, #tpu.dimension_semantics<arbitrary>], iteration_bounds = array<i64: 2, 1>, scalar_prefetch = 0 : i64, scratch_operands = 2 : i64, tpu.core_type = #tpu.core_type<tc>, window_params = [{transform_indices = @transform_0, window_bounds = array<i64: 1, 4, 16>}, {pipeline_mode = #tpu.pipeline_mode<synchronous>, transform_indices = @transform_1, window_bounds = array<i64: 16, 12>}, {pipeline_mode = #tpu.pipeline_mode<synchronous>, transform_indices = @transform_2, window_bounds = array<i64: 16, 1>}, {pipeline_mode = #tpu.pipeline_mode<synchronous>, transform_indices = @transform_3, window_bounds = array<i64: 8, 24>}, {pipeline_mode = #tpu.pipeline_mode<synchronous>, transform_indices = @transform_4, window_bounds = array<i64: 8, 1>}, {transform_indices = @transform_5, window_bounds = array<i64: 1, 8, 16>}]} {
    %c0_i32 = arith.constant 0 : i32
    %0 = arith.cmpi eq, %arg1, %c0_i32 : i32
    %1 = arith.extui %0 : i1 to i32
    %c0_i32_0 = arith.constant 0 : i32
    %2 = arith.cmpi ne, %1, %c0_i32_0 : i32
    scf.if %2 {
      %cst_33 = arith.constant 0.000000e+00 : f32
      %40 = vector.broadcast %cst_33 : f32 to vector<4x128xf32>
      %c0_34 = arith.constant 0 : index
      %c0_35 = arith.constant 0 : index
      %41 = vector.load %arg8[%c0_34, %c0_35] : memref<4x144xf32, #tpu.memory_space<vmem>>, vector<4x128xf32>
      tpu.vector_store %arg8[%c0_34, %c0_35], %40 {strides = array<i32>} : memref<4x144xf32, #tpu.memory_space<vmem>>, vector<4x128xf32>,
      %cst_36 = arith.constant 0.000000e+00 : f32
      %42 = vector.broadcast %cst_36 : f32 to vector<8x128xf32>
      %c0_37 = arith.constant 0 : index
      %c0_38 = arith.constant 0 : index
      %43 = vector.load %arg9[%c0_37, %c0_38] : memref<8x144xf32, #tpu.memory_space<vmem>>, vector<8x128xf32>
      tpu.vector_store %arg9[%c0_37, %c0_38], %42 {strides = array<i32>} : memref<8x144xf32, #tpu.memory_space<vmem>>, vector<8x128xf32>,
    } else {
    }
    %c0 = arith.constant 0 : index
    %c0_1 = arith.constant 0 : index
    %c0_2 = arith.constant 0 : index
    %3 = vector.load %arg2[%c0, %c0_1, %c0_2] : memref<1x4x16xf32, #tpu.memory_space<vmem>>, vector<1x4x16xf32>
    %4 = vector.shape_cast %3 : vector<1x4x16xf32> to vector<4x16xf32>
    %c0_3 = arith.constant 0 : index
    %c128 = arith.constant 128 : index
    %5 = vector.load %arg8[%c0_3, %c128] : memref<4x144xf32, #tpu.memory_space<vmem>>, vector<4x16xf32>
    tpu.vector_store %arg8[%c0_3, %c128], %4 {strides = array<i32>} : memref<4x144xf32, #tpu.memory_space<vmem>>, vector<4x16xf32>,
    %c0_4 = arith.constant 0 : index
    %c128_5 = arith.constant 128 : index
    %6 = vector.load %arg8[%c0_4, %c128_5] : memref<4x144xf32, #tpu.memory_space<vmem>>, vector<4x16xf32>
    %c0_6 = arith.constant 0 : index
    %c124 = arith.constant 124 : index
    %7 = vector.load %arg8[%c0_6, %c124] : memref<4x144xf32, #tpu.memory_space<vmem>>, vector<4x16xf32>
    %c0_7 = arith.constant 0 : index
    %c126 = arith.constant 126 : index
    %8 = vector.load %arg8[%c0_7, %c126] : memref<4x144xf32, #tpu.memory_space<vmem>>, vector<4x16xf32>
    %9 = tpu.concatenate %7, %8, %6 in 0 : vector<4x16xf32>, vector<4x16xf32>, vector<4x16xf32> -> vector<12x16xf32>
    %c0_8 = arith.constant 0 : index
    %c0_9 = arith.constant 0 : index
    %10 = vector.load %arg3[%c0_8, %c0_9] : memref<16x12xf32, #tpu.memory_space<vmem>>, vector<16x12xf32>
    %cst = arith.constant dense<0.000000e+00> : vector<16x16xf32>
    %11 = tpu.matmul %10, %9, %cst {dimension_numbers = #tpu.dot_dimension_numbers<[1], [0], [0], [1], [0, 0, 1, 1], [], []>} : vector<16x12xf32>, vector<12x16xf32>, vector<16x16xf32> -> vector<16x16xf32>
    %c0_10 = arith.constant 0 : index
    %c0_11 = arith.constant 0 : index
    %12 = vector.load %arg4[%c0_10, %c0_11] : memref<16x1xf32, #tpu.memory_space<vmem>>, vector<16x1xf32>
    %13 = vector.broadcast %12 : vector<16x1xf32> to vector<16x16xf32>
    %14 = arith.addf %11, %13 : vector<16x16xf32>
    %15 = vector.extract_strided_slice %14 {offsets = [8, 0], sizes = [8, 16], strides = [1, 1]} : vector<16x16xf32> to vector<8x16xf32>
    %16 = vector.extract_strided_slice %14 {offsets = [0, 0], sizes = [8, 16], strides = [1, 1]} : vector<16x16xf32> to vector<8x16xf32>
    %cst_12 = arith.constant 0.000000e+00 : f32
    %17 = vector.broadcast %cst_12 : f32 to vector<8x16xf32>
    %18 = arith.maximumf %16, %17 : vector<8x16xf32>
    %c0_13 = arith.constant 0 : index
    %c128_14 = arith.constant 128 : index
    %19 = vector.load %arg9[%c0_13, %c128_14] : memref<8x144xf32, #tpu.memory_space<vmem>>, vector<8x16xf32>
    tpu.vector_store %arg9[%c0_13, %c128_14], %18 {strides = array<i32>} : memref<8x144xf32, #tpu.memory_space<vmem>>, vector<8x16xf32>,
    %c0_15 = arith.constant 0 : index
    %c128_16 = arith.constant 128 : index
    %20 = vector.load %arg9[%c0_15, %c128_16] : memref<8x144xf32, #tpu.memory_space<vmem>>, vector<8x16xf32>
    %c0_17 = arith.constant 0 : index
    %c124_18 = arith.constant 124 : index
    %21 = vector.load %arg9[%c0_17, %c124_18] : memref<8x144xf32, #tpu.memory_space<vmem>>, vector<8x16xf32>
    %c0_19 = arith.constant 0 : index
    %c126_20 = arith.constant 126 : index
    %22 = vector.load %arg9[%c0_19, %c126_20] : memref<8x144xf32, #tpu.memory_space<vmem>>, vector<8x16xf32>
    %23 = tpu.concatenate %21, %22, %20 in 0 : vector<8x16xf32>, vector<8x16xf32>, vector<8x16xf32> -> vector<24x16xf32>
    %c0_21 = arith.constant 0 : index
    %c0_22 = arith.constant 0 : index
    %24 = vector.load %arg5[%c0_21, %c0_22] : memref<8x24xf32, #tpu.memory_space<vmem>>, vector<8x24xf32>
    %cst_23 = arith.constant dense<0.000000e+00> : vector<8x16xf32>
    %25 = tpu.matmul %24, %23, %cst_23 {dimension_numbers = #tpu.dot_dimension_numbers<[1], [0], [0], [1], [0, 0, 1, 1], [], []>} : vector<8x24xf32>, vector<24x16xf32>, vector<8x16xf32> -> vector<8x16xf32>
    %c0_24 = arith.constant 0 : index
    %c0_25 = arith.constant 0 : index
    %26 = vector.load %arg6[%c0_24, %c0_25] : memref<8x1xf32, #tpu.memory_space<vmem>>, vector<8x1xf32>
    %27 = vector.broadcast %26 : vector<8x1xf32> to vector<8x16xf32>
    %28 = arith.addf %25, %27 : vector<8x16xf32>
    %cst_26 = arith.constant 0.000000e+00 : f32
    %29 = vector.broadcast %cst_26 : f32 to vector<8x16xf32>
    %30 = arith.maximumf %28, %29 : vector<8x16xf32>
    %31 = arith.addf %30, %15 : vector<8x16xf32>
    %cst_27 = arith.constant 0.000000e+00 : f32
    %32 = vector.broadcast %cst_27 : f32 to vector<8x16xf32>
    %33 = arith.maximumf %31, %32 : vector<8x16xf32>
    %c0_28 = arith.constant 0 : index
    %c0_29 = arith.constant 0 : index
    %c0_30 = arith.constant 0 : index
    %34 = vector.load %arg7[%c0_28, %c0_29, %c0_30] : memref<1x8x16xf32, #tpu.memory_space<vmem>>, vector<1x8x16xf32>
    %35 = vector.shape_cast %34 : vector<1x8x16xf32> to vector<8x16xf32>
    %36 = vector.shape_cast %33 : vector<8x16xf32> to vector<1x8x16xf32>
    tpu.vector_store %arg7[%c0_28, %c0_29, %c0_30], %36 {strides = array<i32>} : memref<1x8x16xf32, #tpu.memory_space<vmem>>, vector<1x8x16xf32>,
    %c0_i32_31 = arith.constant 0 : i32
    %37 = arith.cmpi ne, %arg1, %c0_i32_31 : i32
    %38 = arith.extui %37 : i1 to i32
    %c0_i32_32 = arith.constant 0 : i32
    %39 = arith.cmpi ne, %38, %c0_i32_32 : i32
    scf.if %39 {
      %c0_33 = arith.constant 0 : index
      %c140 = arith.constant 140 : index
      %40 = vector.load %arg8[%c0_33, %c140] : memref<4x144xf32, #tpu.memory_space<vmem>>, vector<4x4xf32>
      %c0_34 = arith.constant 0 : index
      %c124_35 = arith.constant 124 : index
      %41 = vector.load %arg8[%c0_34, %c124_35] : memref<4x144xf32, #tpu.memory_space<vmem>>, vector<4x4xf32>
      tpu.vector_store %arg8[%c0_34, %c124_35], %40 {strides = array<i32>} : memref<4x144xf32, #tpu.memory_space<vmem>>, vector<4x4xf32>,
      %c0_36 = arith.constant 0 : index
      %c140_37 = arith.constant 140 : index
      %42 = vector.load %arg9[%c0_36, %c140_37] : memref<8x144xf32, #tpu.memory_space<vmem>>, vector<8x4xf32>
      %c0_38 = arith.constant 0 : index
      %c124_39 = arith.constant 124 : index
      %43 = vector.load %arg9[%c0_38, %c124_39] : memref<8x144xf32, #tpu.memory_space<vmem>>, vector<8x4xf32>
      tpu.vector_store %arg9[%c0_38, %c124_39], %42 {strides = array<i32>} : memref<8x144xf32, #tpu.memory_space<vmem>>, vector<8x4xf32>,
    } else {
    }
    return
  }
  func.func @transform_0(%arg0: i32, %arg1: i32) -> (i32, i32, i32) {
    %c0_i32 = arith.constant 0 : i32
    %c0_i32_0 = arith.constant 0 : i32
    return %arg0, %c0_i32, %arg1 : i32, i32, i32
  }
  func.func @transform_1(%arg0: i32, %arg1: i32) -> (i32, i32) {
    %c0_i32 = arith.constant 0 : i32
    %c0_i32_0 = arith.constant 0 : i32
    %c0_i32_1 = arith.constant 0 : i32
    return %c0_i32, %c0_i32_0 : i32, i32
  }
  func.func @transform_2(%arg0: i32, %arg1: i32) -> (i32, i32) {
    %c0_i32 = arith.constant 0 : i32
    %c0_i32_0 = arith.constant 0 : i32
    %c0_i32_1 = arith.constant 0 : i32
    return %c0_i32, %c0_i32_0 : i32, i32
  }
  func.func @transform_3(%arg0: i32, %arg1: i32) -> (i32, i32) {
    %c0_i32 = arith.constant 0 : i32
    %c0_i32_0 = arith.constant 0 : i32
    %c0_i32_1 = arith.constant 0 : i32
    return %c0_i32, %c0_i32_0 : i32, i32
  }
  func.func @transform_4(%arg0: i32, %arg1: i32) -> (i32, i32) {
    %c0_i32 = arith.constant 0 : i32
    %c0_i32_0 = arith.constant 0 : i32
    %c0_i32_1 = arith.constant 0 : i32
    return %c0_i32, %c0_i32_0 : i32, i32
  }
  func.func @transform_5(%arg0: i32, %arg1: i32) -> (i32, i32, i32) {
    %c0_i32 = arith.constant 0 : i32
    %c0_i32_0 = arith.constant 0 : i32
    return %arg0, %c0_i32, %arg1 : i32, i32, i32
  }
}

</mosaic_0001>

<bundles_post_ra>
// kernel: tpu_custom_call.1
= control target key start
LH: loop header
LB: loop body
LE: loop exit
PB: predicated region body
PF: predicated region fallthrough
CT: control target
= control target key end

     0   :  { %10 = vsyncpa [#allocation5], 0  ;;  %s937_s0 = inlined_call_operand.vmem [shape: f32[2,4,16], index: 0, kind: input, shape index: {}]   ;;  %s938_s1 = inlined_call_operand.vmem [shape: f32[16,12], index: 1, kind: input, shape index: {}]   ;;  %s939_s2 = inlined_call_operand.vmem [shape: f32[16,1], index: 2, kind: input, shape index: {}]   ;;  %s940_s3 = inlined_call_operand.hbm [shape: f32[8,24], index: 3, kind: input, shape index: {}]   ;;  %s941_s4 = inlined_call_operand.vmem [shape: f32[8,1], index: 4, kind: input, shape index: {}]   ;;  %s942_s5 = inlined_call_operand.hbm [shape: f32[2,8,16], index: 5, kind: output, shape index: {}]  }
   0x1   :  { %11 = vsyncpa [#allocation6], 0 }
   0x2   :  { %13 = vsyncpa [#allocation6 + $0x1], 0  ;;  %s804_s18 = smov 0   ;;  %s806_s19 = smov 0  }
   0x3   :  { %s808_s20 = smov 0   ;;  %s810_s21 = smov 0  }
   0x4   :  { %s812_s22 = smov 0   ;;  %s814_s23 = smov 0  }
   0x5 LB: > { %s536_s24 = sadd.s32 4294967295, %s766_s23   ;;  %s537_s25 = sadd.s32 4294967294, %s766_s23   ;;  %s766_s23 = sphi %s814_s23, %s19_s23   ;;  %s762_s22 = sphi %s812_s22, %s949_s22   ;;  %s758_s21 = sphi %s810_s21, %s948_s21   ;;  %s754_s20 = sphi %s808_s20, %s947_s20   ;;  %s750_s19 = sphi %s806_s19, %s946_s19   ;;  %s746_s18 = sphi %s804_s18, %s945_s18  }
   0x6   : > { %s31_s26 = sadd.s32 1, %s762_s22  ;;  %s152_s27 = sadd.s32 1, %s754_s20 }
   0x7   : > { %p33_p0 = scmp.ge.s32.totalorder %s31_s26, 2  ;;  %p162_p1 = scmp.ne.s32.totalorder %s754_s20, %s750_s19 }
   0x8   : > { %p163_p2 = scmp.eq.s32.totalorder %s536_s24, 1  ;;  %p168_p3 = scmp.ne.s32.totalorder %s750_s19, %s746_s18 }
   0x9   : > { %s951_s26 = smov (%p33_p0, %s31_s26), 0  ;;  %p169_p5 = scmp.eq.s32.totalorder %s537_s25, 1 }
   0xa   : > { %p844_p4 = por %p163_p2, %p162_p1  ;;  %s147_s29 = ssub.s32 %s762_s22, %s951_s26 }
   0xb   : > { %p538_p6 = scmp.ge.s32.totalorder %s766_s23, 1  ;;  %p150_p7 = scmp.eq.s32.totalorder %s147_s29, 0 }
   0xc   : > { %p851_p8 = por %p169_p5, %p168_p3  ;;  %p176_p9 = scmp.lt.s32.totalorder %s766_s23, 3 }
   0xd   : > { %s857_s6 = scalar_select %p150_p7, %s754_s20, %s152_s27  }
   0xe   : > { %p177_p10 = pnand %p538_p6, %p176_p9  ;;  %p569_p11 = scmp.eq.s32.totalorder %s536_s24, 0 }
   0xf   : > { %s194_s9 = sshll.u32 %s940_s3, 4  ;;  %s768_s10 = smov [#allocation4]   ;;  %s195_s9 = int_to_ptr.hbm [resolvable:$true] %s194_s9 }
  0x10   : > { %p561_p12 = pneg %p177_p10  ;;  %s196_s11 = sshll.u32 %s768_s10, 4  ;;  %s197_s11 = int_to_ptr.vmem [resolvable:$true] %s196_s11 }
  0x11   : > { %222 = sbr.rel (%p177_p10) target bundleno = 820 (0x334), region = 40 }
  0x12   : > { %p562_p13 = pnand %p569_p11, %p561_p12 }
  0x14   : > { %564 = dma.hbm_to_vmem [thread:$0]  (!%p562_p13), %s195_s9, 128, %s197_s11, [#allocation5]  }
  0x16   : > { %737 = dma.done.wait (%p569_p11), [#allocation5], 128  }
  0x17   : > { %739 = vsyncadd (%p569_p11), [#allocation5], 4294967168  ;;  %p253_p0 = scmp.lt.s32.totalorder %s758_s21, 1  ;;  %v769_v0 = vmov 0.0   ;;  %vm267_vm0 = vcmask 125952   ;;  %s770_s17 = smov 126  }
  0x18   : > { %264 = vst [vmem:[#allocation2] sm:$0xf] %v769_v0  ;;  %s771_s24 = smov 124   ;;  %vm285_vm1 = vcmask 1031168   ;;  %s772_s25 = smov 4   ;;  %vm294_vm2 = vcmask 1043456  }
  0x19   : > { %s254_s12 = scalar_select %p253_p0, %s758_s21, 1  ;;  %v299_v18 = vld [vmem:[%s939_s2] sm:$0xff]  ;;  %v773_v19 = vmov 0   ;;  %vm319_vm3 = vcmask 31744   ;;  %vm322_vm4 = vcmask 97280   ;;  %v298_v26 = vld [vmem:[%s938_s1 + $0x8] sm:$0xff] }
  0x1a   : > { %636 = vset.pattern.permute.xlu2 %v773_v19  ;;  %652 = vset.pattern.permute.xlu1 %v773_v19  ;;  %v297_v24 = vld [vmem:[%s938_s1] sm:$0xff]  ;;  %vm355_vm5 = vcmask 130048   ;;  %v300_v36 = vld [vmem:[%s939_s2 + $0x8] sm:$0xff]  ;;  %vm390_vm6 = vcmask 195584   ;;  %s250_s15 = sand.u32 1, %s750_s19  }
  0x1b   : > { %s544_s13 = sshll.u32 %s254_s12, 2  ;;  %303 = vperm.xlu2 %636, %v299_v18   ;;  %653 = vset.pattern.permute.xlu0 %v773_v19  ;;  %v369_v41 = vld [vmem:[%s941_s4] sm:$0xff] }
  0x1c   : > { %s259_s16 = scalar_lea.vmem %s937_s0, %s544_s13  ;;  %v368_v50 = vld [vmem:[#allocation4] sm:$0xff]  ;;  %s704_s13 = scalar_lea.hbm %s942_s5, 16 }
  0x1d   : > { %v266_v1 = vld [vmem:[%s259_s16] sm:$0xf]  ;;  %s543_s16 = sshll.u32 %s250_s15, 3 }
  0x1e   : > { %268 = vst.msk [vmem:[#allocation2 + $0x4] sm:$0xf] %vm267_vm0, %v266_v1  ;;  %s252_s29 = scalar_lea.vmem [#allocation7], %s543_s16 }
  0x1f   : > { %s450_s7 = sshll.u32 %s252_s29, 4  ;;  %s451_s7 = int_to_ptr.vmem [resolvable:$true] %s450_s7 }
  0x25   : > { %v270_v2 = vld [vmem:[#allocation2] sm:$0xff] }
  0x26   : > { %272 = vst [vmem:[#allocation1] ss:$2 sm:$0xff] %v270_v2  ;;  %v269_v5 = vld [vmem:[#allocation2 + $0x4] sm:$0xf] }
  0x2d   : > { %v273_v3 = vld.sshfl [vmem:[#allocation1] sm:$0xff pattern:$0x75316420]  ;;  %v274_v4 = vld.sshfl [vmem:[#allocation1 + $0x8] sm:$0xff pattern:$0x75316420] }
  0x2e   : > { %278 = vst [vmem:[#allocation1 + $0x1] ss:$2 sm:$0xff] %v270_v2 }
  0x35   : > { %v279_v6 = vld.sshfl [vmem:[#allocation1] sm:$0xff pattern:$0x75316420]  ;;  %v280_v7 = vld.sshfl [vmem:[#allocation1 + $0x8] sm:$0xff pattern:$0x75316420] }
  0x36   : > { %v626_v8 = vpack.i.bf16 %v280_v7, %v279_v6  ;;  %290 = vst [vmem:[#allocation1] ss:$2 sm:$0xff] %v269_v5 }
  0x38   : > { %627 = vrot.lane.b32.xlu0 %v626_v8, %s770_s17 }
  0x3d   : > { %v291_v9 = vld.sshfl [vmem:[#allocation1] sm:$0xff pattern:$0x75316420] }
  0x40   : > { %292 = vrot.lane.b32.xlu0 %v291_v9, %s771_s24 }
  0x75   : > { %v304_v27 = vpop.permute.xlu2 %303 }
  0xaa   : > { %v628_v10 = vpop.permute.xlu0 %627 }
  0xab   : > { %v630_v11 = vunpack.i.h.bf16 %v628_v10  ;;  %v629_v12 = vunpack.i.l.bf16 %v628_v10 }
  0xad   : > { %v286_v14 = vsel %vm285_vm1, %v629_v12, %v630_v11  ;;  %v296_v16 = vsel %vm294_vm2, %v274_v4, %v630_v11 }
  0xae   : > { %v295_v15 = vsel %vm294_vm2, %v273_v3, %v286_v14 }
  0xaf   : > { %v631_v17 = vpack.i.bf16 %v296_v16, %v295_v15 }
  0xb2   : > { %v293_v13 = vpop.permute.xlu0 %292 }
  0xb3   : > { %317 = vrot.lane.b32.xlu1 %v293_v13, %s772_s25 }
  0xbb   : > { %632 = vrot.lane.b32.xlu1 %v631_v17, %s772_s25 }
 0x125   : > { %v318_v20 = vpop.permute.xlu1 %317 }
 0x126   : > { %545 = vmatpush.msk.msra.mxu0 %vm294_vm2, %v318_v20  ;;  %553 = vmatpush.msk.msra.mxu2 %vm294_vm2, %v318_v20 }
 0x12d   : > { %v633_v21 = vpop.permute.xlu1 %632 }
 0x12e   : > { %v635_v22 = vunpack.i.h.bf16 %v633_v21  ;;  %v634_v23 = vunpack.i.l.bf16 %v633_v21 }
 0x130   : > { %v320_v25 = vsel %vm319_vm3, %v634_v23, %v635_v22 }
 0x131   : > { %346 = vmatpush.msra.mxu0 %v320_v25  ;;  %554 = vmatpush.msra.mxu2 %v320_v25 }
 0x132   : > { %546 = vmatmul.msk.f32.vlgmr.msra.gmra.mxu0 %vm322_vm4, %v297_v24  ;;  %547 = vmatmul.msk.f32.vlgmr.msra.gmra.mxu2 %vm322_vm4, %v298_v26 }
 0x1af   : > { %v348_v28 = vpop.f32.mrf.mxu0 }
 0x1b0   : > { %v349_v29 = vadd.f32 %v348_v28, %v304_v27 }
 0x1b2   : > { %v354_v30 = vmax.f32 %v349_v29, 0.0 }
 0x1b4   : > { %356 = vst.msk [vmem:[#allocation3 + $0x8] sm:$0xff] %vm355_vm5, %v354_v30 }
 0x1b5   : > { %v351_v53 = vpop.f32.mrf.mxu2 }
 0x1bb   : > { %v357_v31 = vld [vmem:[#allocation3 + $0x8] sm:$0xff] }
 0x1bc   : > { %366 = vrot.lane.b32.xlu0 %v357_v31, %s771_s24  ;;  %v637_v32 = vpack.i.bf16 %v357_v31, %v769_v0 }
 0x1be   : > { %638 = vrot.lane.b32.xlu2 %v637_v32, %s770_s17  ;;  %s550_s17 = sshll.u32 %s758_s21, 3  ;;  %s437_s21 = scalar_lea.sflag [#allocation6], %s250_s15 }
 0x1bf   : > { %s448_s27 = scalar_lea.hbm %s942_s5, %s550_s17 }
 0x1c0   : > { %s452_s8 = sshll.u32 %s448_s27, 4  ;;  %s453_s8 = int_to_ptr.hbm [resolvable:$true] %s452_s8 }
 0x1c1   : > { %s698_s9 = sshra.s32 %s453_s8, 4  ;;  %s699_s9 = int_to_ptr.hbm [resolvable:$true] %s698_s9 }
 0x1c2   : > { %s700_s10 = scalar_lea.hbm %s699_s9, 8  ;;  %p705_p5 = scmp.lt.s32.totalorder %s699_s9, %s942_s5 }
 0x1c3   : > { %p701_p1 = scmp.ne.s32.totalorder %s699_s9, %s700_s10  ;;  %p706_p6 = scmp.lt.s32.totalorder %s704_s13, %s700_s10 }
 0x1c4   : > { %377 = vrot.lane.b32.xlu0 %v357_v31, %s772_s25 }
 0x1c5   : > { %p702_p2 = pnand %p701_p1, %p844_p4  ;;  %p707_p7 = por %p706_p6, %p705_p5 }
 0x1c7   : > { %p703_p3 = pneg %p702_p2 }
 0x1c9   : > { %p708_p9 = pnand %p707_p7, %p703_p3 }
 0x218   : > { %v639_v33 = vpop.permute.xlu2 %638 }
 0x219   : > { %v641_v34 = vunpack.i.h.bf16 %v639_v33  ;;  %v640_v37 = vunpack.i.l.bf16 %v639_v33 }
 0x21b   : > { %v647_v35 = vpack.i.bf16 0.0, %v641_v34  ;;  %v365_v39 = vsel %vm285_vm1, %v640_v37, %v641_v34 }
 0x21d   : > { %648 = vrot.lane.b32.xlu2 %v647_v35, %s772_s25 }
 0x225   : > { %308 = vperm.xlu2 %636, %v300_v36  }
 0x22e   : > { %v367_v38 = vpop.permute.xlu0 %366 }
 0x22f   : > { %v642_v40 = vpack.i.bf16 %v365_v39, %v367_v38 }
 0x231   : > { %643 = vrot.lane.b32.xlu1 %v642_v40, %s772_s25 }
 0x236   : > { %v378_v49 = vpop.permute.xlu0 %377 }
 0x239   : > { %372 = vperm.xlu1 %652, %v369_v41  }
 0x277   : > { %v649_v42 = vpop.permute.xlu2 %648 }
 0x278   : > { %v650_v44 = vunpack.i.l.bf16 %v649_v42  ;;  %v651_v47 = vunpack.i.h.bf16 %v649_v42 }
 0x27a   : > { %v385_v51 = vsel %vm319_vm3, %v651_v47, %v378_v49 }
 0x27f   : > { %v309_v54 = vpop.permute.xlu2 %308 }
 0x280   : > { %v352_v57 = vadd.f32 %v351_v53, %v309_v54 }
 0x2a3   : > { %v644_v43 = vpop.permute.xlu1 %643 }
 0x2a4   : > { %v646_v45 = vunpack.i.h.bf16 %v644_v43  ;;  %v645_v46 = vunpack.i.l.bf16 %v644_v43 }
 0x2a6   : > { %407 = vmatpush.msra.mxu1 %v645_v46  ;;  %v386_v48 = vsel %vm319_vm3, %v646_v45, %v650_v44 }
 0x2a8   : > { %408 = vmatpush.msra.mxu1 %v386_v48 }
 0x2aa   : > { %409 = vmatpush.msra.mxu1 %v385_v51 }
 0x2ab   : > { %548 = vmatmul.msk.f32.vlgmr.msra.gmra.mxu1 %vm390_vm6, %v368_v50  ;;  %v373_v52 = vpop.permute.xlu1 %372 }
 0x328   : > { %v411_v55 = vpop.f32.mrf.mxu1 }
 0x329   : > { %v412_v56 = vadd.f32 %v411_v55, %v373_v52 }
 0x32b   : > { %v414_v58 = vmax.f32 %v412_v56, 0.0 }
 0x32d   : > { %v415_v59 = vadd.f32 %v414_v58, %v352_v57 }
 0x32f   : > { %v416_v60 = vmax.f32 %v415_v59, 0.0 }
 0x331   : > { %417 = vst.msk [vmem:[%s252_s29] sm:$0xff] %vm355_vm5, %v416_v60 }
 0x332   : > { %711 = shalt.err (!%p708_p9)
}
 0x333   : > { %559 = dma.vmem_to_hbm [thread:$0]  (%p844_p4), %s451_s7, 128, %s453_s8, %s437_s21  }
 0x334 PF: > { %p571_p10 = scmp.ge.s32.totalorder %s766_s23, 2  ;;  %s464_s15 = sand.u32 1, %s746_s18  }
 0x335   : > { %s465_s17 = scalar_lea.sflag [#allocation6], %s464_s15 }
 0x336   : > { %p566_p11 = pnand %p571_p10, %p851_p8 }
 0x338   : > { %p567_p12 = pneg %p566_p11 }
 0x33a   : > { %741 = dma.done.wait (%p567_p12), %s465_s17, 128  }
 0x33b   : > { %743 = vsyncadd (%p567_p12), %s465_s17, 4294967168  ;;  %s19_s23 = sadd.s32 1, %s766_s23   ;;  %s945_s18 = smov %s750_s19 }
 0x33c   : > { %p16_p13 = scmp.ge.s32.totalorder %s19_s23, 4   ;;  %s946_s19 = smov %s754_s20 }
 0x33d   : > { %s947_s20 = smov %s857_s6  ;;  %s948_s21 = smov %s762_s22 }
 0x33e   : > { %s949_s22 = smov %s951_s26  ;;  %18 = sbr.rel (!%p16_p13) target bundleno = 5 (0x5), region = 89 }
 0x343   :  { %471 = vsyncpa [#allocation5], 1 }
 0x344   :  { %473 = vsyncpa [#allocation5 + $0x1], 1 }
 0x345   :  { %474 = vsyncpa [#allocation6], 1 }
 0x346   :  { %476 = vsyncpa [#allocation6 + $0x1], 1 }

</bundles_post_ra>
